<compile_context>
chip_gen: v5e
topology: v5e:2x2
jax: 0.10.0
libtpu: 0.0.40
codegen_flags: <defaults>
</compile_context>

<pallas_src>
import numpy as np

import jax
import jax.numpy as jnp
from jax import lax
from jax.experimental import pallas as pl
from jax.experimental.pallas import tpu as pltpu

EPS = 1e-5  # PyTorch BatchNorm2d default eps


# ----------------------------------------------------------------------------
# Fused kernel: one grid step = one batch element.
#   x_ref   : (H+2, W*Cin)   input rows, 1-row zero halo (lane = w*Cin + ci)
#   t_ref   : (H, T)         t[b] broadcast over rows
#   wt_ref  : (T, W*Cout)    time Linear weight with "repeat" + BN1 scale folded in
#   w1_ref  : (3*W*Cin, W*Cout)   conv1 weight, width taps folded (banded)
#   w2_ref  : (3*W*Cout, W*Cout)  conv2 weight, width taps folded (banded)
#   w3_ref  : (4*W*Cout, Wo*Cout) transform weight, width taps folded (banded, stride 2)
#   g3_ref  : (4, Ho, H)     one-hot stride-2 row-gather matrices for the 4 kh taps
#   o_ref   : (Ho, Wo*Cout)  output rows (lane = wo*Cout + co)
#   apad_ref: (H+2, W*Cout)  VMEM scratch: conv2 input with 1-row halo
# ----------------------------------------------------------------------------
def _block_kernel(x_ref, t_ref, wt_ref, w1_ref, b1_ref, s1_ref, c1_ref,
                  w2_ref, b2_ref, w3_ref, s2_ref, c2_ref, g3_ref,
                  o_ref, apad_ref):
    f32 = jnp.float32
    H = x_ref.shape[0] - 2          # image rows
    Lx = x_ref.shape[1]             # W * Cin
    L = b1_ref.shape[1]             # W * Cout

    # ---- conv1 (3x3, pad 1) + bias + ReLU: 3 row-shifted dots (width taps in weight) ----
    a = jnp.dot(x_ref[0:H, :],      w1_ref[0:Lx, :],       preferred_element_type=f32)
    a += jnp.dot(x_ref[1:H + 1, :], w1_ref[Lx:2 * Lx, :],  preferred_element_type=f32)
    a += jnp.dot(x_ref[2:H + 2, :], w1_ref[2 * Lx:3 * Lx, :], preferred_element_type=f32)
    a = jnp.maximum(a + b1_ref[...], 0.0)                   # (H, W*Cout), lane-dense

    # ---- time-embedding add + BatchNorm1 (eval), dropout = identity -------------------
    # tadd already carries the modular "repeat" broadcast and the BN1 scale (folded into
    # wt_ref in the wrapper); c1 carries BN1 shift + scaled time bias.
    tadd = jnp.dot(t_ref[...], wt_ref[...], preferred_element_type=f32)   # (H, W*Cout)
    a = a * s1_ref[...] + tadd + c1_ref[...]
    # TODO(synk): Dropout(0.05) training-mode RNG not reproduced; eval-mode identity here.

    # ---- conv2 (3x3, pad 1) + bias + ReLU: zero only the 1-row halo, single K=3L dot ---
    apad_ref[0:1, :] = jnp.zeros((1, L), f32)
    apad_ref[H + 1:H + 2, :] = jnp.zeros((1, L), f32)
    apad_ref[1:H + 1, :] = a
    cols2 = jnp.concatenate(
        [apad_ref[0:H, :], a, apad_ref[2:H + 2, :]], axis=1)              # (H, 3*W*Cout)
    c = jnp.dot(cols2, w2_ref[...], preferred_element_type=f32)
    c = jnp.maximum(c + b2_ref[...], 0.0)                                 # (H, W*Cout)

    # ---- transform Conv2d(4x4, stride 2, pad 1) + BatchNorm2 (eval) --------------------
    # Stride-2 row gather via 4 tiny one-hot dots; width taps folded into w3 -> one dot.
    taps = [jnp.dot(g3_ref[kh], c, preferred_element_type=f32) for kh in range(4)]
    cols3 = jnp.concatenate(taps, axis=1)                                 # (Ho, 4*W*Cout)
    y = jnp.dot(cols3, w3_ref[...], preferred_element_type=f32)           # (Ho, Wo*Cout)
    o_ref[...] = y * s2_ref[...] + c2_ref[...]


# ----------------------------------------------------------------------------
# Wrapper: layout conversion + parameter packing (all constant-ish glue), one pallas_call
# ----------------------------------------------------------------------------
def block_forward(x_nchw, t, p):
    B, Cin, H, W = x_nchw.shape
    T = t.shape[1]
    Co = p["b1"].shape[0]
    if H != W or H % T != 0:
        raise ValueError("Block.forward's time broadcast requires H == W and H % time_emb_dim == 0")
    Ho, Wo = H // 2, W // 2
    f32 = jnp.float32
    hp = lax.Precision.HIGHEST  # only used for exact *parameter* packing, not activations

    # activations: NCHW -> per-batch row layout (row = h, lane = w*C + c), 1-row halo for conv1
    x_rows = jnp.transpose(x_nchw, (0, 2, 3, 1)).reshape(B, H, W * Cin).astype(f32)
    x_rows = jnp.pad(x_rows, ((0, 0), (1, 1), (0, 0)))
    t_rep = jnp.broadcast_to(t.astype(f32)[:, None, :], (B, H, T))

    # fold eval-mode BatchNorm into per-channel affine, tiled along the lane axis
    def fold_bn(g, be, m, v):
        s = g / jnp.sqrt(v + EPS)
        return s, be - m * s

    s1, sh1 = fold_bn(p["g1"], p["be1"], p["m1"], p["v1"])
    s2, sh2 = fold_bn(p["g2"], p["be2"], p["m2"], p["v2"])
    s1_lane = jnp.tile(s1, W)[None, :]
    b1_lane = jnp.tile(p["b1"], W)[None, :]
    b2_lane = jnp.tile(p["b2"], W)[None, :]
    s2_lane = jnp.tile(s2, Wo)[None, :]

    # time path: fold the modular "repeat" (add t[b, w % T]) and the BN1 scale into the
    # Linear weight -> a single (H,T)@(T,W*Co) dot in the kernel.
    widx = np.arange(W) % T
    wt_fold = jnp.repeat(p["wt"][widx, :], Co, axis=0).T        # (T, W*Co): col(w*Co+c)=Wt[w%T,:]
    bt_fold = jnp.repeat(p["bt"][widx], Co)[None, :]            # (1, W*Co)
    wt_eff = (wt_fold * s1_lane).astype(f32)
    c1_lane = jnp.tile(sh1, W)[None, :] + s1_lane * bt_fold     # BN1 shift + scaled time bias
    c2_lane = jnp.tile(sh2, Wo)[None, :] + s2_lane * jnp.tile(p["b3"], Wo)[None, :]  # BN2 shift + scaled conv bias

    # conv weights, width-expanded into banded (row-in, row-out) matmul operands
    kw3 = np.arange(3)
    wp = np.arange(W)
    wo = np.arange(Wo)
    Q = (wp[None, :, None] == wp[None, None, :] + kw3[:, None, None] - 1).astype(np.float32)   # (3,W,W)
    w1_big = jnp.einsum('qpw,oikq->kpiwo', Q, p["w1"].astype(f32),
                        precision=hp).reshape(3 * W * Cin, W * Co)
    w2_big = jnp.einsum('qpw,oikq->kpiwo', Q, p["w2"].astype(f32),
                        precision=hp).reshape(3 * W * Co, W * Co)
    kw4 = np.arange(4)
    Q3 = (wp[None, :, None] == 2 * wo[None, None, :] - 1 + kw4[:, None, None]).astype(np.float32)  # (4,W,Wo)
    w3_big = jnp.einsum('qpv,oikq->kpivo', Q3, p["w3"].astype(f32),
                        precision=hp).reshape(4 * W * Co, Wo * Co)

    # one-hot stride-2 row-gather matrices for the 4x4 transform conv (trace-time constants)
    G = np.zeros((4, Ho, H), np.float32)
    for kh in range(4):
        for ho in range(Ho):
            hh = 2 * ho - 1 + kh
            if 0 <= hh < H:
                G[kh, ho, hh] = 1.0
    g3 = jnp.asarray(G)

    def full(*shape):
        return pl.BlockSpec(shape, lambda b, _n=len(shape): (0,) * _n)

    out3 = pl.pallas_call(
        _block_kernel,
        out_shape=jax.ShapeDtypeStruct((B, Ho, Wo * Co), f32),
        grid=(B,),
        in_specs=[
            pl.BlockSpec((None, H + 2, W * Cin), lambda b: (b, 0, 0)),   # x rows (per batch)
            pl.BlockSpec((None, H, T), lambda b: (b, 0, 0)),             # t rows (per batch)
            full(T, W * Co),                                             # wt_eff
            full(3 * W * Cin, W * Co),                                   # w1_big
            full(1, W * Co),                                             # b1_lane
            full(1, W * Co),                                             # s1_lane
            full(1, W * Co),                                             # c1_lane
            full(3 * W * Co, W * Co),                                    # w2_big
            full(1, W * Co),                                             # b2_lane
            full(4 * W * Co, Wo * Co),                                   # w3_big
            full(1, Wo * Co),                                            # s2_lane
            full(1, Wo * Co),                                            # c2_lane
            full(4, Ho, H),                                              # g3
        ],
        out_specs=pl.BlockSpec((None, Ho, Wo * Co), lambda b: (b, 0, 0)),
        scratch_shapes=[pltpu.VMEM((H + 2, W * Co), jnp.float32)],
        compiler_params=pltpu.CompilerParams(
            dimension_semantics=("parallel",),          # batch steps are independent
            vmem_limit_bytes=32 * 1024 * 1024,          # explicit cap; actual use << 1 MiB here
        ),
    )(x_rows, t_rep, wt_eff, w1_big, b1_lane, s1_lane, c1_lane,
      w2_big, b2_lane, w3_big, s2_lane, c2_lane, g3)

    # glue: back to PyTorch NCHW
    return out3.reshape(B, Ho, Wo, Co).transpose(0, 3, 1, 2)


# ----------------------------------------------------------------------------
# Pure-JAX reference (mirrors the PyTorch forward, eval mode) for validation
# ----------------------------------------------------------------------------
def reference_forward(x, t, p):
    dn = ("NCHW", "OIHW", "NCHW")
    hp = lax.Precision.HIGHEST

    def bn(h, g, be, m, v):
        return (h - m[None, :, None, None]) / jnp.sqrt(v[None, :, None, None] + EPS) \
               * g[None, :, None, None] + be[None, :, None, None]

    temb = jnp.dot(t, p["wt"].T, precision=hp) + p["bt"]
    h = lax.conv_general_dilated(x, p["w1"], (1, 1), ((1, 1), (1, 1)),
                                 dimension_numbers=dn, precision=hp)
    h = jnp.maximum(h + p["b1"][None, :, None, None], 0.0)
    Bc, C, Hh, Ww = h.shape
    rep = jnp.tile(temb[:, None, None, :], (1, C, Ww, Hh // temb.shape[1]))
    h = h + rep
    h = bn(h, p["g1"], p["be1"], p["m1"], p["v1"])
    # dropout: identity in eval mode
    h = lax.conv_general_dilated(h, p["w2"], (1, 1), ((1, 1), (1, 1)),
                                 dimension_numbers=dn, precision=hp)
    h = jnp.maximum(h + p["b2"][None, :, None, None], 0.0)
    h = lax.conv_general_dilated(h, p["w3"], (2, 2), ((1, 1), (1, 1)),
                                 dimension_numbers=dn, precision=hp)
    h = h + p["b3"][None, :, None, None]
    return bn(h, p["g2"], p["be2"], p["m2"], p["v2"])


# ----------------------------------------------------------------------------
# Deterministic parameter init (shapes from Block.__init__ with up=False)
# ----------------------------------------------------------------------------
def init_params(key, Cin, Cout, T):
    ks = jax.random.split(key, 16)

    def u(k, shape, fan_in):
        b = 1.0 / float(fan_in) ** 0.5
        return jax.random.uniform(k, shape, jnp.float32, -b, b)

    return {
        "wt": u(ks[0], (T, T), T), "bt": u(ks[1], (T,), T),
        "w1": u(ks[2], (Cout, Cin, 3, 3), Cin * 9), "b1": u(ks[3], (Cout,), Cin * 9),
        "w2": u(ks[4], (Cout, Cout, 3, 3), Cout * 9), "b2": u(ks[5], (Cout,), Cout * 9),
        "w3": u(ks[6], (Cout, Cout, 4, 4), Cout * 16), "b3": u(ks[7], (Cout,), Cout * 16),
        "g1": 1.0 + 0.1 * jax.random.normal(ks[8], (Cout,), jnp.float32),
        "be1": 0.1 * jax.random.normal(ks[9], (Cout,), jnp.float32),
        "m1": 0.1 * jax.random.normal(ks[10], (Cout,), jnp.float32),
        "v1": jnp.abs(1.0 + 0.1 * jax.random.normal(ks[11], (Cout,), jnp.float32)),
        "g2": 1.0 + 0.1 * jax.random.normal(ks[12], (Cout,), jnp.float32),
        "be2": 0.1 * jax.random.normal(ks[13], (Cout,), jnp.float32),
        "m2": 0.1 * jax.random.normal(ks[14], (Cout,), jnp.float32),
        "v2": jnp.abs(1.0 + 0.1 * jax.random.normal(ks[15], (Cout,), jnp.float32)),
    }


if __name__ == "__main__":
    # Small shapes consistent with the forward's constraints (H == W, H % time_emb_dim == 0)
    B, Cin, Cout, H, W, T = 2, 4, 8, 16, 16, 8

    root = jax.random.PRNGKey(0)
    kp, kx, kt = jax.random.split(root, 3)
    params = init_params(kp, Cin, Cout, T)
    x = jax.random.normal(kx, (B, Cin, H, W), jnp.float32)
    t = jax.random.normal(kt, (B, T), jnp.float32)

    out = jax.block_until_ready(jax.jit(block_forward)(x, t, params))
    ref = jax.block_until_ready(reference_forward(x, t, params))

    assert out.shape == (B, Cout, H // 2, W // 2), out.shape
    max_err = float(jnp.max(jnp.abs(out - ref)))
    # Kernel matmuls use DEFAULT (single-pass bf16, f32-accumulate) MXU precision per the
    # perf review, so the tolerance is set at bf16 level for this 3-matmul-deep chain.
    if not bool(jnp.allclose(out, ref, atol=2e-2, rtol=2e-2)):
        raise AssertionError(f"kernel/reference mismatch, max abs err = {max_err}")
    print("KERNEL_OK")
</pallas_src>

<mosaic_0001>
module attributes {stable_mosaic.version = 11 : i64} {
  func.func @_block_kernel(%arg0: i32, %arg1: memref<1x18x64xf32, #tpu.memory_space<vmem>>, %arg2: memref<1x16x8xf32, #tpu.memory_space<vmem>>, %arg3: memref<8x128xf32, #tpu.memory_space<vmem>>, %arg4: memref<192x128xf32, #tpu.memory_space<vmem>>, %arg5: memref<1x128xf32, #tpu.memory_space<vmem>>, %arg6: memref<1x128xf32, #tpu.memory_space<vmem>>, %arg7: memref<1x128xf32, #tpu.memory_space<vmem>>, %arg8: memref<384x128xf32, #tpu.memory_space<vmem>>, %arg9: memref<1x128xf32, #tpu.memory_space<vmem>>, %arg10: memref<512x64xf32, #tpu.memory_space<vmem>>, %arg11: memref<1x64xf32, #tpu.memory_space<vmem>>, %arg12: memref<1x64xf32, #tpu.memory_space<vmem>>, %arg13: memref<4x8x16xf32, #tpu.memory_space<vmem>>, %arg14: memref<1x8x64xf32, #tpu.memory_space<vmem>>, %arg15: memref<18x128xf32, #tpu.memory_space<vmem>>) attributes {dimension_semantics = [#tpu.dimension_semantics<parallel>], iteration_bounds = array<i64: 2>, scalar_prefetch = 0 : i64, scratch_operands = 1 : i64, tpu.core_type = #tpu.core_type<tc>, window_params = [{transform_indices = @transform_0, window_bounds = array<i64: 1, 18, 64>}, {transform_indices = @transform_1, window_bounds = array<i64: 1, 16, 8>}, {pipeline_mode = #tpu.pipeline_mode<synchronous>, transform_indices = @transform_2, window_bounds = array<i64: 8, 128>}, {pipeline_mode = #tpu.pipeline_mode<synchronous>, transform_indices = @transform_3, window_bounds = array<i64: 192, 128>}, {pipeline_mode = #tpu.pipeline_mode<synchronous>, transform_indices = @transform_4, window_bounds = array<i64: 1, 128>}, {pipeline_mode = #tpu.pipeline_mode<synchronous>, transform_indices = @transform_5, window_bounds = array<i64: 1, 128>}, {pipeline_mode = #tpu.pipeline_mode<synchronous>, transform_indices = @transform_6, window_bounds = array<i64: 1, 128>}, {pipeline_mode = #tpu.pipeline_mode<synchronous>, transform_indices = @transform_7, window_bounds = array<i64: 384, 128>}, {pipeline_mode = #tpu.pipeline_mode<synchronous>, transform_indices = @transform_8, window_bounds = array<i64: 1, 128>}, {pipeline_mode = #tpu.pipeline_mode<synchronous>, transform_indices = @transform_9, window_bounds = array<i64: 512, 64>}, {pipeline_mode = #tpu.pipeline_mode<synchronous>, transform_indices = @transform_10, window_bounds = array<i64: 1, 64>}, {pipeline_mode = #tpu.pipeline_mode<synchronous>, transform_indices = @transform_11, window_bounds = array<i64: 1, 64>}, {pipeline_mode = #tpu.pipeline_mode<synchronous>, transform_indices = @transform_12, window_bounds = array<i64: 4, 8, 16>}, {transform_indices = @transform_13, window_bounds = array<i64: 1, 8, 64>}]} {
    %c0 = arith.constant 0 : index
    %c0_0 = arith.constant 0 : index
    %c0_1 = arith.constant 0 : index
    %0 = vector.load %arg1[%c0, %c0_0, %c0_1] : memref<1x18x64xf32, #tpu.memory_space<vmem>>, vector<1x16x64xf32>
    %1 = vector.shape_cast %0 : vector<1x16x64xf32> to vector<16x64xf32>
    %c0_2 = arith.constant 0 : index
    %c0_3 = arith.constant 0 : index
    %2 = vector.load %arg4[%c0_2, %c0_3] : memref<192x128xf32, #tpu.memory_space<vmem>>, vector<64x128xf32>
    %cst = arith.constant dense<0.000000e+00> : vector<16x128xf32>
    %3 = tpu.matmul %1, %2, %cst {dimension_numbers = #tpu.dot_dimension_numbers<[1], [0], [0], [1], [0, 0, 1, 1], [], []>} : vector<16x64xf32>, vector<64x128xf32>, vector<16x128xf32> -> vector<16x128xf32>
    %c0_4 = arith.constant 0 : index
    %c1 = arith.constant 1 : index
    %c0_5 = arith.constant 0 : index
    %4 = vector.load %arg1[%c0_4, %c1, %c0_5] : memref<1x18x64xf32, #tpu.memory_space<vmem>>, vector<1x16x64xf32>
    %5 = vector.shape_cast %4 : vector<1x16x64xf32> to vector<16x64xf32>
    %c64 = arith.constant 64 : index
    %c0_6 = arith.constant 0 : index
    %6 = vector.load %arg4[%c64, %c0_6] : memref<192x128xf32, #tpu.memory_space<vmem>>, vector<64x128xf32>
    %cst_7 = arith.constant dense<0.000000e+00> : vector<16x128xf32>
    %7 = tpu.matmul %5, %6, %cst_7 {dimension_numbers = #tpu.dot_dimension_numbers<[1], [0], [0], [1], [0, 0, 1, 1], [], []>} : vector<16x64xf32>, vector<64x128xf32>, vector<16x128xf32> -> vector<16x128xf32>
    %8 = arith.addf %3, %7 : vector<16x128xf32>
    %c0_8 = arith.constant 0 : index
    %c2 = arith.constant 2 : index
    %c0_9 = arith.constant 0 : index
    %9 = vector.load %arg1[%c0_8, %c2, %c0_9] : memref<1x18x64xf32, #tpu.memory_space<vmem>>, vector<1x16x64xf32>
    %10 = vector.shape_cast %9 : vector<1x16x64xf32> to vector<16x64xf32>
    %c128 = arith.constant 128 : index
    %c0_10 = arith.constant 0 : index
    %11 = vector.load %arg4[%c128, %c0_10] : memref<192x128xf32, #tpu.memory_space<vmem>>, vector<64x128xf32>
    %cst_11 = arith.constant dense<0.000000e+00> : vector<16x128xf32>
    %12 = tpu.matmul %10, %11, %cst_11 {dimension_numbers = #tpu.dot_dimension_numbers<[1], [0], [0], [1], [0, 0, 1, 1], [], []>} : vector<16x64xf32>, vector<64x128xf32>, vector<16x128xf32> -> vector<16x128xf32>
    %13 = arith.addf %8, %12 : vector<16x128xf32>
    %c0_12 = arith.constant 0 : index
    %c0_13 = arith.constant 0 : index
    %14 = vector.load %arg5[%c0_12, %c0_13] : memref<1x128xf32, #tpu.memory_space<vmem>>, vector<1x128xf32>
    %15 = vector.broadcast %14 : vector<1x128xf32> to vector<16x128xf32>
    %16 = arith.addf %13, %15 : vector<16x128xf32>
    %cst_14 = arith.constant 0.000000e+00 : f32
    %17 = vector.broadcast %cst_14 : f32 to vector<16x128xf32>
    %18 = arith.maximumf %16, %17 : vector<16x128xf32>
    %c0_15 = arith.constant 0 : index
    %c0_16 = arith.constant 0 : index
    %c0_17 = arith.constant 0 : index
    %19 = vector.load %arg2[%c0_15, %c0_16, %c0_17] : memref<1x16x8xf32, #tpu.memory_space<vmem>>, vector<1x16x8xf32>
    %20 = vector.shape_cast %19 : vector<1x16x8xf32> to vector<16x8xf32>
    %c0_18 = arith.constant 0 : index
    %c0_19 = arith.constant 0 : index
    %21 = vector.load %arg3[%c0_18, %c0_19] : memref<8x128xf32, #tpu.memory_space<vmem>>, vector<8x128xf32>
    %cst_20 = arith.constant dense<0.000000e+00> : vector<16x128xf32>
    %22 = tpu.matmul %20, %21, %cst_20 {dimension_numbers = #tpu.dot_dimension_numbers<[1], [0], [0], [1], [0, 0, 1, 1], [], []>} : vector<16x8xf32>, vector<8x128xf32>, vector<16x128xf32> -> vector<16x128xf32>
    %c0_21 = arith.constant 0 : index
    %c0_22 = arith.constant 0 : index
    %23 = vector.load %arg6[%c0_21, %c0_22] : memref<1x128xf32, #tpu.memory_space<vmem>>, vector<1x128xf32>
    %24 = vector.broadcast %23 : vector<1x128xf32> to vector<16x128xf32>
    %25 = arith.mulf %18, %24 : vector<16x128xf32>
    %26 = arith.addf %25, %22 : vector<16x128xf32>
    %c0_23 = arith.constant 0 : index
    %c0_24 = arith.constant 0 : index
    %27 = vector.load %arg7[%c0_23, %c0_24] : memref<1x128xf32, #tpu.memory_space<vmem>>, vector<1x128xf32>
    %28 = vector.broadcast %27 : vector<1x128xf32> to vector<16x128xf32>
    %29 = arith.addf %26, %28 : vector<16x128xf32>
    %cst_25 = arith.constant 0.000000e+00 : f32
    %30 = vector.broadcast %cst_25 : f32 to vector<1x128xf32>
    %c0_26 = arith.constant 0 : index
    %c0_27 = arith.constant 0 : index
    %31 = vector.load %arg15[%c0_26, %c0_27] : memref<18x128xf32, #tpu.memory_space<vmem>>, vector<1x128xf32>
    tpu.vector_store %arg15[%c0_26, %c0_27], %30 {strides = array<i32>} : memref<18x128xf32, #tpu.memory_space<vmem>>, vector<1x128xf32>,
    %cst_28 = arith.constant 0.000000e+00 : f32
    %32 = vector.broadcast %cst_28 : f32 to vector<1x128xf32>
    %c17 = arith.constant 17 : index
    %c0_29 = arith.constant 0 : index
    %33 = vector.load %arg15[%c17, %c0_29] : memref<18x128xf32, #tpu.memory_space<vmem>>, vector<1x128xf32>
    tpu.vector_store %arg15[%c17, %c0_29], %32 {strides = array<i32>} : memref<18x128xf32, #tpu.memory_space<vmem>>, vector<1x128xf32>,
    %c1_30 = arith.constant 1 : index
    %c0_31 = arith.constant 0 : index
    %34 = vector.load %arg15[%c1_30, %c0_31] : memref<18x128xf32, #tpu.memory_space<vmem>>, vector<16x128xf32>
    tpu.vector_store %arg15[%c1_30, %c0_31], %29 {strides = array<i32>} : memref<18x128xf32, #tpu.memory_space<vmem>>, vector<16x128xf32>,
    %c0_32 = arith.constant 0 : index
    %c0_33 = arith.constant 0 : index
    %35 = vector.load %arg15[%c0_32, %c0_33] : memref<18x128xf32, #tpu.memory_space<vmem>>, vector<16x128xf32>
    %c2_34 = arith.constant 2 : index
    %c0_35 = arith.constant 0 : index
    %36 = vector.load %arg15[%c2_34, %c0_35] : memref<18x128xf32, #tpu.memory_space<vmem>>, vector<16x128xf32>
    %37 = tpu.concatenate %35, %29, %36 in 1 : vector<16x128xf32>, vector<16x128xf32>, vector<16x128xf32> -> vector<16x384xf32>
    %c0_36 = arith.constant 0 : index
    %c0_37 = arith.constant 0 : index
    %38 = vector.load %arg8[%c0_36, %c0_37] : memref<384x128xf32, #tpu.memory_space<vmem>>, vector<384x128xf32>
    %cst_38 = arith.constant dense<0.000000e+00> : vector<16x128xf32>
    %39 = tpu.matmul %37, %38, %cst_38 {dimension_numbers = #tpu.dot_dimension_numbers<[1], [0], [0], [1], [0, 0, 1, 1], [], []>} : vector<16x384xf32>, vector<384x128xf32>, vector<16x128xf32> -> vector<16x128xf32>
    %c0_39 = arith.constant 0 : index
    %c0_40 = arith.constant 0 : index
    %40 = vector.load %arg9[%c0_39, %c0_40] : memref<1x128xf32, #tpu.memory_space<vmem>>, vector<1x128xf32>
    %41 = vector.broadcast %40 : vector<1x128xf32> to vector<16x128xf32>
    %42 = arith.addf %39, %41 : vector<16x128xf32>
    %cst_41 = arith.constant 0.000000e+00 : f32
    %43 = vector.broadcast %cst_41 : f32 to vector<16x128xf32>
    %44 = arith.maximumf %42, %43 : vector<16x128xf32>
    %c0_42 = arith.constant 0 : index
    %c0_43 = arith.constant 0 : index
    %c0_44 = arith.constant 0 : index
    %45 = vector.load %arg13[%c0_42, %c0_43, %c0_44] : memref<4x8x16xf32, #tpu.memory_space<vmem>>, vector<1x8x16xf32>
    %46 = vector.shape_cast %45 : vector<1x8x16xf32> to vector<8x16xf32>
    %cst_45 = arith.constant dense<0.000000e+00> : vector<8x128xf32>
    %47 = tpu.matmul %46, %44, %cst_45 {dimension_numbers = #tpu.dot_dimension_numbers<[1], [0], [0], [1], [0, 0, 1, 1], [], []>} : vector<8x16xf32>, vector<16x128xf32>, vector<8x128xf32> -> vector<8x128xf32>
    %c1_46 = arith.constant 1 : index
    %c0_47 = arith.constant 0 : index
    %c0_48 = arith.constant 0 : index
    %48 = vector.load %arg13[%c1_46, %c0_47, %c0_48] : memref<4x8x16xf32, #tpu.memory_space<vmem>>, vector<1x8x16xf32>
    %49 = vector.shape_cast %48 : vector<1x8x16xf32> to vector<8x16xf32>
    %cst_49 = arith.constant dense<0.000000e+00> : vector<8x128xf32>
    %50 = tpu.matmul %49, %44, %cst_49 {dimension_numbers = #tpu.dot_dimension_numbers<[1], [0], [0], [1], [0, 0, 1, 1], [], []>} : vector<8x16xf32>, vector<16x128xf32>, vector<8x128xf32> -> vector<8x128xf32>
    %c2_50 = arith.constant 2 : index
    %c0_51 = arith.constant 0 : index
    %c0_52 = arith.constant 0 : index
    %51 = vector.load %arg13[%c2_50, %c0_51, %c0_52] : memref<4x8x16xf32, #tpu.memory_space<vmem>>, vector<1x8x16xf32>
    %52 = vector.shape_cast %51 : vector<1x8x16xf32> to vector<8x16xf32>
    %cst_53 = arith.constant dense<0.000000e+00> : vector<8x128xf32>
    %53 = tpu.matmul %52, %44, %cst_53 {dimension_numbers = #tpu.dot_dimension_numbers<[1], [0], [0], [1], [0, 0, 1, 1], [], []>} : vector<8x16xf32>, vector<16x128xf32>, vector<8x128xf32> -> vector<8x128xf32>
    %c3 = arith.constant 3 : index
    %c0_54 = arith.constant 0 : index
    %c0_55 = arith.constant 0 : index
    %54 = vector.load %arg13[%c3, %c0_54, %c0_55] : memref<4x8x16xf32, #tpu.memory_space<vmem>>, vector<1x8x16xf32>
    %55 = vector.shape_cast %54 : vector<1x8x16xf32> to vector<8x16xf32>
    %cst_56 = arith.constant dense<0.000000e+00> : vector<8x128xf32>
    %56 = tpu.matmul %55, %44, %cst_56 {dimension_numbers = #tpu.dot_dimension_numbers<[1], [0], [0], [1], [0, 0, 1, 1], [], []>} : vector<8x16xf32>, vector<16x128xf32>, vector<8x128xf32> -> vector<8x128xf32>
    %57 = tpu.concatenate %47, %50, %53, %56 in 1 : vector<8x128xf32>, vector<8x128xf32>, vector<8x128xf32>, vector<8x128xf32> -> vector<8x512xf32>
    %c0_57 = arith.constant 0 : index
    %c0_58 = arith.constant 0 : index
    %58 = vector.load %arg10[%c0_57, %c0_58] : memref<512x64xf32, #tpu.memory_space<vmem>>, vector<512x64xf32>
    %cst_59 = arith.constant dense<0.000000e+00> : vector<8x64xf32>
    %59 = tpu.matmul %57, %58, %cst_59 {dimension_numbers = #tpu.dot_dimension_numbers<[1], [0], [0], [1], [0, 0, 1, 1], [], []>} : vector<8x512xf32>, vector<512x64xf32>, vector<8x64xf32> -> vector<8x64xf32>
    %c0_60 = arith.constant 0 : index
    %c0_61 = arith.constant 0 : index
    %60 = vector.load %arg11[%c0_60, %c0_61] : memref<1x64xf32, #tpu.memory_space<vmem>>, vector<1x64xf32>
    %61 = vector.broadcast %60 : vector<1x64xf32> to vector<8x64xf32>
    %62 = arith.mulf %59, %61 : vector<8x64xf32>
    %c0_62 = arith.constant 0 : index
    %c0_63 = arith.constant 0 : index
    %63 = vector.load %arg12[%c0_62, %c0_63] : memref<1x64xf32, #tpu.memory_space<vmem>>, vector<1x64xf32>
    %64 = vector.broadcast %63 : vector<1x64xf32> to vector<8x64xf32>
    %65 = arith.addf %62, %64 : vector<8x64xf32>
    %c0_64 = arith.constant 0 : index
    %c0_65 = arith.constant 0 : index
    %c0_66 = arith.constant 0 : index
    %66 = vector.load %arg14[%c0_64, %c0_65, %c0_66] : memref<1x8x64xf32, #tpu.memory_space<vmem>>, vector<1x8x64xf32>
    %67 = vector.shape_cast %66 : vector<1x8x64xf32> to vector<8x64xf32>
    %68 = vector.shape_cast %65 : vector<8x64xf32> to vector<1x8x64xf32>
    tpu.vector_store %arg14[%c0_64, %c0_65, %c0_66], %68 {strides = array<i32>} : memref<1x8x64xf32, #tpu.memory_space<vmem>>, vector<1x8x64xf32>,
    return
  }
  func.func @transform_0(%arg0: i32) -> (i32, i32, i32) {
    %c0_i32 = arith.constant 0 : i32
    %c0_i32_0 = arith.constant 0 : i32
    %c0_i32_1 = arith.constant 0 : i32
    return %arg0, %c0_i32, %c0_i32_0 : i32, i32, i32
  }
  func.func @transform_1(%arg0: i32) -> (i32, i32, i32) {
    %c0_i32 = arith.constant 0 : i32
    %c0_i32_0 = arith.constant 0 : i32
    %c0_i32_1 = arith.constant 0 : i32
    return %arg0, %c0_i32, %c0_i32_0 : i32, i32, i32
  }
  func.func @transform_2(%arg0: i32) -> (i32, i32) {
    %c0_i32 = arith.constant 0 : i32
    %c0_i32_0 = arith.constant 0 : i32
    %c0_i32_1 = arith.constant 0 : i32
    return %c0_i32, %c0_i32_0 : i32, i32
  }
  func.func @transform_3(%arg0: i32) -> (i32, i32) {
    %c0_i32 = arith.constant 0 : i32
    %c0_i32_0 = arith.constant 0 : i32
    %c0_i32_1 = arith.constant 0 : i32
    return %c0_i32, %c0_i32_0 : i32, i32
  }
  func.func @transform_4(%arg0: i32) -> (i32, i32) {
    %c0_i32 = arith.constant 0 : i32
    %c0_i32_0 = arith.constant 0 : i32
    %c0_i32_1 = arith.constant 0 : i32
    return %c0_i32, %c0_i32_0 : i32, i32
  }
  func.func @transform_5(%arg0: i32) -> (i32, i32) {
    %c0_i32 = arith.constant 0 : i32
    %c0_i32_0 = arith.constant 0 : i32
    %c0_i32_1 = arith.constant 0 : i32
    return %c0_i32, %c0_i32_0 : i32, i32
  }
  func.func @transform_6(%arg0: i32) -> (i32, i32) {
    %c0_i32 = arith.constant 0 : i32
    %c0_i32_0 = arith.constant 0 : i32
    %c0_i32_1 = arith.constant 0 : i32
    return %c0_i32, %c0_i32_0 : i32, i32
  }
  func.func @transform_7(%arg0: i32) -> (i32, i32) {
    %c0_i32 = arith.constant 0 : i32
    %c0_i32_0 = arith.constant 0 : i32
    %c0_i32_1 = arith.constant 0 : i32
    return %c0_i32, %c0_i32_0 : i32, i32
  }
  func.func @transform_8(%arg0: i32) -> (i32, i32) {
    %c0_i32 = arith.constant 0 : i32
    %c0_i32_0 = arith.constant 0 : i32
    %c0_i32_1 = arith.constant 0 : i32
    return %c0_i32, %c0_i32_0 : i32, i32
  }
  func.func @transform_9(%arg0: i32) -> (i32, i32) {
    %c0_i32 = arith.constant 0 : i32
    %c0_i32_0 = arith.constant 0 : i32
    %c0_i32_1 = arith.constant 0 : i32
    return %c0_i32, %c0_i32_0 : i32, i32
  }
  func.func @transform_10(%arg0: i32) -> (i32, i32) {
    %c0_i32 = arith.constant 0 : i32
    %c0_i32_0 = arith.constant 0 : i32
    %c0_i32_1 = arith.constant 0 : i32
    return %c0_i32, %c0_i32_0 : i32, i32
  }
  func.func @transform_11(%arg0: i32) -> (i32, i32) {
    %c0_i32 = arith.constant 0 : i32
    %c0_i32_0 = arith.constant 0 : i32
    %c0_i32_1 = arith.constant 0 : i32
    return %c0_i32, %c0_i32_0 : i32, i32
  }
  func.func @transform_12(%arg0: i32) -> (i32, i32, i32) {
    %c0_i32 = arith.constant 0 : i32
    %c0_i32_0 = arith.constant 0 : i32
    %c0_i32_1 = arith.constant 0 : i32
    %c0_i32_2 = arith.constant 0 : i32
    return %c0_i32, %c0_i32_0, %c0_i32_1 : i32, i32, i32
  }
  func.func @transform_13(%arg0: i32) -> (i32, i32, i32) {
    %c0_i32 = arith.constant 0 : i32
    %c0_i32_0 = arith.constant 0 : i32
    %c0_i32_1 = arith.constant 0 : i32
    return %arg0, %c0_i32, %c0_i32_0 : i32, i32, i32
  }
}

</mosaic_0001>

<bundles_post_ra>
// kernel: tile.38
= control target key start
LH: loop header
LB: loop body
LE: loop exit
PB: predicated region body
PF: predicated region fallthrough
CT: control target
= control target key end

     0   :  { %s28_s0 = inlined_call_operand.vmem [shape: f32[8], index: 0, kind: input, shape index: {}]   ;;  %s29_s1 = inlined_call_operand.vmem [shape: f32[16,8], index: 1, kind: output, shape index: {}]  }
   0x1   :  { %v4_v0 = vld [vmem:[%s28_s0] ss:$0 sm:$0xff] }
   0x2   :  { %5 = vst [vmem:[%s29_s1] sm:$0xff] %v4_v0 }
   0x3   :  { %8 = vst [vmem:[%s29_s1 + $0x8] sm:$0xff] %v4_v0 }

// kernel: tile.39
= control target key start
LH: loop header
LB: loop body
LE: loop exit
PB: predicated region body
PF: predicated region fallthrough
CT: control target
= control target key end

     0   :  { %s131_s10 = smov 120   ;;  %s132_s11 = smov 104   ;;  %vm3_vm0 = vcmask 64512   ;;  %vm9_vm1 = vcmask 1048512   ;;  %vm15_vm2 = vcmask 982912   ;;  %vm21_vm3 = vcmask 917312   ;;  %s207_s0 = inlined_call_operand.vmem [shape: f32[16,8], index: 0, kind: input, shape index: {}]   ;;  %s208_s1 = inlined_call_operand.vmem [shape: f32[1,128], index: 1, kind: output, shape index: {}]  }
   0x1   :  { %v101_v0 = vld [vmem:[%s207_s0 + $0xf] sm:$0x1]   ;;  %v103_v1 = vld [vmem:[%s207_s0 + $0xd] sm:$0x1]   ;;  %v105_v2 = vld [vmem:[%s207_s0 + $0xb] sm:$0x1]  }
   0x2   :  { %7 = vrot.lane.b32.xlu0 %v101_v0, %s131_s10  ;;  %19 = vrot.lane.b32.xlu1 %v103_v1, %s132_s11  ;;  %s133_s14 = smov 88   ;;  %v102_v3 = vld [vmem:[%s207_s0 + $0xe] sm:$0x1]   ;;  %v104_v4 = vld [vmem:[%s207_s0 + $0xc] sm:$0x1]   ;;  %s134_s19 = smov 112  }
   0x3   :  { %31 = vrot.lane.b32.xlu2 %v105_v2, %s133_s14  ;;  %s135_s20 = smov 96   ;;  %v106_v5 = vld [vmem:[%s207_s0 + $0xa] sm:$0x1]   ;;  %s136_s23 = smov 80   ;;  %v107_v6 = vld [vmem:[%s207_s0 + $0x9] sm:$0x1]  }
   0x4   :  { %v108_v7 = vld [vmem:[%s207_s0 + $0x8] sm:$0x1]   ;;  %s137_s28 = smov 72   ;;  %s138_s29 = smov 64   ;;  %v109_v8 = vld [vmem:[%s207_s0 + $0x7] sm:$0x1]  }
   0x5   :  { %s139_s3 = smov 56   ;;  %v110_v9 = vld [vmem:[%s207_s0 + $0x6] sm:$0x1]   ;;  %v111_v10 = vld [vmem:[%s207_s0 + $0x5] sm:$0x1]   ;;  %s140_s8 = smov 48  }
   0x6   :  { %s141_s9 = smov 40   ;;  %v112_v11 = vld [vmem:[%s207_s0 + $0x4] sm:$0x1]   ;;  %s142_s12 = smov 32   ;;  %v113_v12 = vld [vmem:[%s207_s0 + $0x3] sm:$0x1]  }
   0x7   :  { %v114_v13 = vld [vmem:[%s207_s0 + $0x2] sm:$0x1]   ;;  %s143_s17 = smov 24   ;;  %s144_s18 = smov 16   ;;  %v115_v14 = vld [vmem:[%s207_s0 + $0x1] sm:$0x1]  }
   0x8   :  { %s145_s21 = smov 8   ;;  %v2_v15 = vld [vmem:[%s207_s0] sm:$0x1]   ;;  %vm27_vm4 = vcmask 851712   ;;  %vm33_vm5 = vcmask 786112   ;;  %vm39_vm6 = vcmask 720512  }
   0x9   :  { %4 = vst.msk [vmem:[#allocation0] sm:$0x1] %vm3_vm0, %v2_v15   ;;  %vm45_vm7 = vcmask 654912   ;;  %vm51_vm8 = vcmask 589312   ;;  %vm57_vm9 = vcmask 523712   ;;  %vm63_vm10 = vcmask 458112  }
   0xa   :  { %13 = vrot.lane.b32.xlu0 %v102_v3, %s134_s19  ;;  %25 = vrot.lane.b32.xlu1 %v104_v4, %s135_s20  ;;  %vm69_vm11 = vcmask 392512   ;;  %vm75_vm12 = vcmask 326912   ;;  %vm81_vm13 = vcmask 261312   ;;  %vm87_vm14 = vcmask 195712  }
   0xb   :  { %37 = vrot.lane.b32.xlu2 %v106_v5, %s136_s23  ;;  %vm93_vm15 = vcmask 130112  }
  0x12   :  { %43 = vrot.lane.b32.xlu0 %v107_v6, %s137_s28  ;;  %49 = vrot.lane.b32.xlu1 %v108_v7, %s138_s29 }
  0x13   :  { %55 = vrot.lane.b32.xlu2 %v109_v8, %s139_s3 }
  0x1a   :  { %61 = vrot.lane.b32.xlu0 %v110_v9, %s140_s8  ;;  %67 = vrot.lane.b32.xlu1 %v111_v10, %s141_s9 }
  0x1b   :  { %73 = vrot.lane.b32.xlu2 %v112_v11, %s142_s12 }
  0x22   :  { %79 = vrot.lane.b32.xlu0 %v113_v12, %s143_s17  ;;  %85 = vrot.lane.b32.xlu1 %v114_v13, %s144_s18 }
  0x23   :  { %91 = vrot.lane.b32.xlu2 %v115_v14, %s145_s21 }
  0x5d   :  { %v32_v16 = vpop.permute.xlu2 %31  }
  0x65   :  { %v38_v17 = vpop.permute.xlu2 %37  }
  0x6d   :  { %v56_v18 = vpop.permute.xlu2 %55  }
  0x74   :  { %v8_v19 = vpop.permute.xlu0 %7   ;;  %v20_v20 = vpop.permute.xlu1 %19  }
  0x75   :  { %10 = vst.msk [vmem:[#allocation0] sm:$0x1] %vm9_vm1, %v8_v19   ;;  %v74_v21 = vpop.permute.xlu2 %73  }
  0x7c   :  { %v14_v22 = vpop.permute.xlu0 %13   ;;  %v26_v23 = vpop.permute.xlu1 %25  }
  0x7d   :  { %16 = vst.msk [vmem:[#allocation0] sm:$0x1] %vm15_vm2, %v14_v22   ;;  %v92_v24 = vpop.permute.xlu2 %91  }
  0x7e   :  { %22 = vst.msk [vmem:[#allocation0] sm:$0x1] %vm21_vm3, %v20_v20  }
  0x7f   :  { %28 = vst.msk [vmem:[#allocation0] sm:$0x1] %vm27_vm4, %v26_v23  }
  0x80   :  { %34 = vst.msk [vmem:[#allocation0] sm:$0x1] %vm33_vm5, %v32_v16  }
  0x81   :  { %40 = vst.msk [vmem:[#allocation0] sm:$0x1] %vm39_vm6, %v38_v17  }
  0x84   :  { %v44_v25 = vpop.permute.xlu0 %43   ;;  %v50_v26 = vpop.permute.xlu1 %49  }
  0x85   :  { %46 = vst.msk [vmem:[#allocation0] sm:$0x1] %vm45_vm7, %v44_v25  }
  0x86   :  { %52 = vst.msk [vmem:[#allocation0] sm:$0x1] %vm51_vm8, %v50_v26  }
  0x87   :  { %58 = vst.msk [vmem:[#allocation0] sm:$0x1] %vm57_vm9, %v56_v18  }
  0x8c   :  { %v62_v27 = vpop.permute.xlu0 %61   ;;  %v68_v28 = vpop.permute.xlu1 %67  }
  0x8d   :  { %64 = vst.msk [vmem:[#allocation0] sm:$0x1] %vm63_vm10, %v62_v27  }
  0x8e   :  { %70 = vst.msk [vmem:[#allocation0] sm:$0x1] %vm69_vm11, %v68_v28  }
  0x8f   :  { %76 = vst.msk [vmem:[#allocation0] sm:$0x1] %vm75_vm12, %v74_v21  }
  0x94   :  { %v80_v29 = vpop.permute.xlu0 %79   ;;  %v86_v30 = vpop.permute.xlu1 %85  }
  0x95   :  { %82 = vst.msk [vmem:[#allocation0] sm:$0x1] %vm81_vm13, %v80_v29  }
  0x96   :  { %88 = vst.msk [vmem:[#allocation0] sm:$0x1] %vm87_vm14, %v86_v30  }
  0x97   :  { %94 = vst.msk [vmem:[#allocation0] sm:$0x1] %vm93_vm15, %v92_v24  }
  0x9e   :  { %v97_v31 = vld [vmem:[#allocation0] sm:$0x1] }
  0x9f   :  { %100 = vst [vmem:[%s208_s1] sm:$0x1] %v97_v31 }

// kernel: mul.11
= control target key start
LH: loop header
LB: loop body
LE: loop exit
PB: predicated region body
PF: predicated region fallthrough
CT: control target
= control target key end

     0   :  { %s131_s10 = smov 120   ;;  %s132_s11 = smov 104   ;;  %vm3_vm0 = vcmask 64512   ;;  %vm9_vm1 = vcmask 1048512   ;;  %vm15_vm2 = vcmask 982912   ;;  %vm21_vm3 = vcmask 917312   ;;  %s207_s0 = inlined_call_operand.vmem [shape: f32[16,8], index: 0, kind: input, shape index: {}]   ;;  %s208_s1 = inlined_call_operand.vmem [shape: f32[128], index: 1, kind: output, shape index: {}]  }
   0x1   :  { %v101_v0 = vld [vmem:[%s207_s0 + $0xf] sm:$0x1]   ;;  %v103_v1 = vld [vmem:[%s207_s0 + $0xd] sm:$0x1]   ;;  %v105_v2 = vld [vmem:[%s207_s0 + $0xb] sm:$0x1]  }
   0x2   :  { %7 = vrot.lane.b32.xlu0 %v101_v0, %s131_s10  ;;  %19 = vrot.lane.b32.xlu1 %v103_v1, %s132_s11  ;;  %s133_s14 = smov 88   ;;  %v102_v3 = vld [vmem:[%s207_s0 + $0xe] sm:$0x1]   ;;  %v104_v4 = vld [vmem:[%s207_s0 + $0xc] sm:$0x1]   ;;  %s134_s19 = smov 112  }
   0x3   :  { %31 = vrot.lane.b32.xlu2 %v105_v2, %s133_s14  ;;  %s135_s20 = smov 96   ;;  %v106_v5 = vld [vmem:[%s207_s0 + $0xa] sm:$0x1]   ;;  %s136_s23 = smov 80   ;;  %v107_v6 = vld [vmem:[%s207_s0 + $0x9] sm:$0x1]  }
   0x4   :  { %v108_v7 = vld [vmem:[%s207_s0 + $0x8] sm:$0x1]   ;;  %s137_s28 = smov 72   ;;  %s138_s29 = smov 64   ;;  %v109_v8 = vld [vmem:[%s207_s0 + $0x7] sm:$0x1]  }
   0x5   :  { %s139_s3 = smov 56   ;;  %v110_v9 = vld [vmem:[%s207_s0 + $0x6] sm:$0x1]   ;;  %v111_v10 = vld [vmem:[%s207_s0 + $0x5] sm:$0x1]   ;;  %s140_s8 = smov 48  }
   0x6   :  { %s141_s9 = smov 40   ;;  %v112_v11 = vld [vmem:[%s207_s0 + $0x4] sm:$0x1]   ;;  %s142_s12 = smov 32   ;;  %v113_v12 = vld [vmem:[%s207_s0 + $0x3] sm:$0x1]  }
   0x7   :  { %v114_v13 = vld [vmem:[%s207_s0 + $0x2] sm:$0x1]   ;;  %s143_s17 = smov 24   ;;  %s144_s18 = smov 16   ;;  %v115_v14 = vld [vmem:[%s207_s0 + $0x1] sm:$0x1]  }
   0x8   :  { %s145_s21 = smov 8   ;;  %v2_v15 = vld [vmem:[%s207_s0] sm:$0x1]   ;;  %vm27_vm4 = vcmask 851712   ;;  %vm33_vm5 = vcmask 786112   ;;  %vm39_vm6 = vcmask 720512  }
   0x9   :  { %4 = vst.msk [vmem:[#allocation0] sm:$0x1] %vm3_vm0, %v2_v15   ;;  %vm45_vm7 = vcmask 654912   ;;  %vm51_vm8 = vcmask 589312   ;;  %vm57_vm9 = vcmask 523712   ;;  %vm63_vm10 = vcmask 458112  }
   0xa   :  { %13 = vrot.lane.b32.xlu0 %v102_v3, %s134_s19  ;;  %25 = vrot.lane.b32.xlu1 %v104_v4, %s135_s20  ;;  %vm69_vm11 = vcmask 392512   ;;  %vm75_vm12 = vcmask 326912   ;;  %vm81_vm13 = vcmask 261312   ;;  %vm87_vm14 = vcmask 195712  }
   0xb   :  { %37 = vrot.lane.b32.xlu2 %v106_v5, %s136_s23  ;;  %vm93_vm15 = vcmask 130112  }
  0x12   :  { %43 = vrot.lane.b32.xlu0 %v107_v6, %s137_s28  ;;  %49 = vrot.lane.b32.xlu1 %v108_v7, %s138_s29 }
  0x13   :  { %55 = vrot.lane.b32.xlu2 %v109_v8, %s139_s3 }
  0x1a   :  { %61 = vrot.lane.b32.xlu0 %v110_v9, %s140_s8  ;;  %67 = vrot.lane.b32.xlu1 %v111_v10, %s141_s9 }
  0x1b   :  { %73 = vrot.lane.b32.xlu2 %v112_v11, %s142_s12 }
  0x22   :  { %79 = vrot.lane.b32.xlu0 %v113_v12, %s143_s17  ;;  %85 = vrot.lane.b32.xlu1 %v114_v13, %s144_s18 }
  0x23   :  { %91 = vrot.lane.b32.xlu2 %v115_v14, %s145_s21 }
  0x5d   :  { %v32_v16 = vpop.permute.xlu2 %31  }
  0x65   :  { %v38_v17 = vpop.permute.xlu2 %37  }
  0x6d   :  { %v56_v18 = vpop.permute.xlu2 %55  }
  0x74   :  { %v8_v19 = vpop.permute.xlu0 %7   ;;  %v20_v20 = vpop.permute.xlu1 %19  }
  0x75   :  { %10 = vst.msk [vmem:[#allocation0] sm:$0x1] %vm9_vm1, %v8_v19   ;;  %v74_v21 = vpop.permute.xlu2 %73  }
  0x7c   :  { %v14_v22 = vpop.permute.xlu0 %13   ;;  %v26_v23 = vpop.permute.xlu1 %25  }
  0x7d   :  { %16 = vst.msk [vmem:[#allocation0] sm:$0x1] %vm15_vm2, %v14_v22   ;;  %v92_v24 = vpop.permute.xlu2 %91  }
  0x7e   :  { %22 = vst.msk [vmem:[#allocation0] sm:$0x1] %vm21_vm3, %v20_v20  }
  0x7f   :  { %28 = vst.msk [vmem:[#allocation0] sm:$0x1] %vm27_vm4, %v26_v23  }
  0x80   :  { %34 = vst.msk [vmem:[#allocation0] sm:$0x1] %vm33_vm5, %v32_v16  }
  0x81   :  { %40 = vst.msk [vmem:[#allocation0] sm:$0x1] %vm39_vm6, %v38_v17  }
  0x84   :  { %v44_v25 = vpop.permute.xlu0 %43   ;;  %v50_v26 = vpop.permute.xlu1 %49  }
  0x85   :  { %46 = vst.msk [vmem:[#allocation0] sm:$0x1] %vm45_vm7, %v44_v25  }
  0x86   :  { %52 = vst.msk [vmem:[#allocation0] sm:$0x1] %vm51_vm8, %v50_v26  }
  0x87   :  { %58 = vst.msk [vmem:[#allocation0] sm:$0x1] %vm57_vm9, %v56_v18  }
  0x8c   :  { %v62_v27 = vpop.permute.xlu0 %61   ;;  %v68_v28 = vpop.permute.xlu1 %67  }
  0x8d   :  { %64 = vst.msk [vmem:[#allocation0] sm:$0x1] %vm63_vm10, %v62_v27  }
  0x8e   :  { %70 = vst.msk [vmem:[#allocation0] sm:$0x1] %vm69_vm11, %v68_v28  }
  0x8f   :  { %76 = vst.msk [vmem:[#allocation0] sm:$0x1] %vm75_vm12, %v74_v21  }
  0x94   :  { %v80_v29 = vpop.permute.xlu0 %79   ;;  %v86_v30 = vpop.permute.xlu1 %85  }
  0x95   :  { %82 = vst.msk [vmem:[#allocation0] sm:$0x1] %vm81_vm13, %v80_v29  }
  0x96   :  { %88 = vst.msk [vmem:[#allocation0] sm:$0x1] %vm87_vm14, %v86_v30  }
  0x97   :  { %94 = vst.msk [vmem:[#allocation0] sm:$0x1] %vm93_vm15, %v92_v24  }
  0x9e   :  { %v97_v31 = vld [vmem:[#allocation0] sm:$0x1] }
  0x9f   :  { %100 = vst [vmem:[%s208_s1] sm:$0x1] %v97_v31 }

// kernel: tile.53
= control target key start
LH: loop header
LB: loop body
LE: loop exit
PB: predicated region body
PF: predicated region fallthrough
CT: control target
= control target key end

     0   :  { %s22_s0 = inlined_call_operand.vmem [shape: f32[8], index: 0, kind: input, shape index: {}]   ;;  %s23_s1 = inlined_call_operand.vmem [shape: f32[8,8], index: 1, kind: output, shape index: {}]  }
   0x1   :  { %v4_v0 = vld [vmem:[%s22_s0] ss:$0 sm:$0xff] }
   0x2   :  { %5 = vst [vmem:[%s23_s1] sm:$0xff] %v4_v0 }

// kernel: tile.54
= control target key start
LH: loop header
LB: loop body
LE: loop exit
PB: predicated region body
PF: predicated region fallthrough
CT: control target
= control target key end

     0   :  { %s67_s10 = smov 56   ;;  %s68_s11 = smov 40   ;;  %vm3_vm0 = vcmask 64512   ;;  %vm9_vm1 = vcmask 523712   ;;  %vm15_vm2 = vcmask 458112   ;;  %vm21_vm3 = vcmask 392512   ;;  %s111_s0 = inlined_call_operand.vmem [shape: f32[8,8], index: 0, kind: input, shape index: {}]   ;;  %s112_s1 = inlined_call_operand.vmem [shape: f32[1,64], index: 1, kind: output, shape index: {}]  }
   0x1   :  { %v53_v0 = vld [vmem:[%s111_s0 + $0x7] sm:$0x1]   ;;  %v55_v1 = vld [vmem:[%s111_s0 + $0x5] sm:$0x1]   ;;  %v57_v2 = vld [vmem:[%s111_s0 + $0x3] sm:$0x1]  }
   0x2   :  { %7 = vrot.lane.b32.xlu0 %v53_v0, %s67_s10  ;;  %19 = vrot.lane.b32.xlu1 %v55_v1, %s68_s11  ;;  %s69_s14 = smov 24   ;;  %v54_v3 = vld [vmem:[%s111_s0 + $0x6] sm:$0x1]   ;;  %v56_v4 = vld [vmem:[%s111_s0 + $0x4] sm:$0x1]   ;;  %s70_s21 = smov 48  }
   0x3   :  { %31 = vrot.lane.b32.xlu2 %v57_v2, %s69_s14  ;;  %v58_v5 = vld [vmem:[%s111_s0 + $0x2] sm:$0x1]   ;;  %s71_s22 = smov 32   ;;  %s72_s23 = smov 16   ;;  %v59_v6 = vld [vmem:[%s111_s0 + $0x1] sm:$0x1]  }
   0x4   :  { %s73_s26 = smov 8   ;;  %v2_v7 = vld [vmem:[%s111_s0] sm:$0x1]   ;;  %vm27_vm4 = vcmask 326912   ;;  %vm33_vm5 = vcmask 261312   ;;  %vm39_vm6 = vcmask 195712  }
   0x5   :  { %4 = vst.msk [vmem:[#allocation0] sm:$0x1] %vm3_vm0, %v2_v7   ;;  %vm45_vm7 = vcmask 130112  }
   0xa   :  { %13 = vrot.lane.b32.xlu0 %v54_v3, %s70_s21  ;;  %25 = vrot.lane.b32.xlu1 %v56_v4, %s71_s22 }
   0xb   :  { %37 = vrot.lane.b32.xlu2 %v58_v5, %s72_s23 }
  0x12   :  { %43 = vrot.lane.b32.xlu0 %v59_v6, %s73_s26 }
  0x5d   :  { %v32_v8 = vpop.permute.xlu2 %31  }
  0x65   :  { %v38_v9 = vpop.permute.xlu2 %37  }
  0x74   :  { %v8_v10 = vpop.permute.xlu0 %7   ;;  %v20_v11 = vpop.permute.xlu1 %19  }
  0x75   :  { %10 = vst.msk [vmem:[#allocation0] sm:$0x1] %vm9_vm1, %v8_v10  }
  0x7c   :  { %v14_v12 = vpop.permute.xlu0 %13   ;;  %v26_v13 = vpop.permute.xlu1 %25  }
  0x7d   :  { %16 = vst.msk [vmem:[#allocation0] sm:$0x1] %vm15_vm2, %v14_v12  }
  0x7e   :  { %22 = vst.msk [vmem:[#allocation0] sm:$0x1] %vm21_vm3, %v20_v11  }
  0x7f   :  { %28 = vst.msk [vmem:[#allocation0] sm:$0x1] %vm27_vm4, %v26_v13  }
  0x80   :  { %34 = vst.msk [vmem:[#allocation0] sm:$0x1] %vm33_vm5, %v32_v8  }
  0x81   :  { %40 = vst.msk [vmem:[#allocation0] sm:$0x1] %vm39_vm6, %v38_v9  }
  0x84   :  { %v44_v14 = vpop.permute.xlu0 %43  }
  0x85   :  { %46 = vst.msk [vmem:[#allocation0] sm:$0x1] %vm45_vm7, %v44_v14  }
  0x8c   :  { %v49_v15 = vld [vmem:[#allocation0] sm:$0x1] }
  0x8d   :  { %52 = vst [vmem:[%s112_s1] sm:$0x1] %v49_v15 }

// kernel: tile.68
= control target key start
LH: loop header
LB: loop body
LE: loop exit
PB: predicated region body
PF: predicated region fallthrough
CT: control target
= control target key end

     0   :  { %2 = vsyncpa [#allocation1], 0  ;;  %s48_s8 = smov [#allocation0]   ;;  %s65_s0 = inlined_call_operand.hbm [shape: f32[8], index: 0, kind: input, shape index: {}]   ;;  %s66_s1 = inlined_call_operand.vmem [shape: f32[8,8], index: 1, kind: output, shape index: {}]  }
   0x1   :  { %s8_s0 = sshll.u32 %s65_s0, 4  ;;  %s10_s9 = sshll.u32 %s48_s8, 4  ;;  %s9_s0 = int_to_ptr.hbm [resolvable:$true] %s8_s0  ;;  %s11_s9 = int_to_ptr.vmem [resolvable:$true] %s10_s9 }
   0x2   :  { %13 = dma.hbm_to_vmem [thread:$0]  %s9_s0, 16, %s11_s9, [#allocation1]  }
   0x3   :  { %46 = dma.done.wait [#allocation1], 16  }
   0x4   :  { %47 = vsyncadd [#allocation1], 4294967280  ;;  %v18_v0 = vld [vmem:[#allocation0] ss:$0 sm:$0xff] }
   0x5   :  { %19 = vst [vmem:[%s66_s1] sm:$0xff] %v18_v0 }
   0x6   :  { %20 = vsyncpa [#allocation1], 1 }

// kernel: block_forward.1
= control target key start
LH: loop header
LB: loop body
LE: loop exit
PB: predicated region body
PF: predicated region fallthrough
CT: control target
= control target key end

     0   :  { %s1207_s25 = smov 0   ;;  %s1698_s0 = inlined_call_operand.vmem [shape: f32[2,18,64], index: 0, kind: input, shape index: {}]   ;;  %s1699_s1 = inlined_call_operand.vmem [shape: f32[2,16,8], index: 1, kind: input, shape index: {}]   ;;  %s1700_s2 = inlined_call_operand.vmem [shape: f32[8,128], index: 2, kind: input, shape index: {}]   ;;  %s1701_s3 = inlined_call_operand.vmem [shape: f32[192,128], index: 3, kind: input, shape index: {}]   ;;  %s1702_s4 = inlined_call_operand.vmem [shape: f32[1,128], index: 4, kind: input, shape index: {}]   ;;  %s1703_s5 = inlined_call_operand.vmem [shape: f32[1,128], index: 5, kind: input, shape index: {}]   ;;  %s1704_s6 = inlined_call_operand.vmem [shape: f32[1,128], index: 6, kind: input, shape index: {}]   ;;  %s1705_s7 = inlined_call_operand.vmem [shape: f32[384,128], index: 7, kind: input, shape index: {}]   ;;  %s1706_s8 = inlined_call_operand.vmem [shape: f32[1,128], index: 8, kind: input, shape index: {}]   ;;  %s1707_s9 = inlined_call_operand.vmem [shape: f32[512,64], index: 9, kind: input, shape index: {}]   ;;  %s1708_s10 = inlined_call_operand.vmem [shape: f32[1,64], index: 10, kind: input, shape index: {}]   ;;  %s1709_s11 = inlined_call_operand.vmem [shape: f32[1,64], index: 11, kind: input, shape index: {}]   ;;  %s1710_s12 = inlined_call_operand.vmem [shape: f32[4,8,16], index: 12, kind: input, shape index: {}]   ;;  %s1711_s13 = inlined_call_operand.vmem [shape: f32[2,8,64], index: 13, kind: output, shape index: {}]  }
   0x1 LB: > { %s1085_s26 = sadd.s32 4294967295, %s1134_s25   ;;  %p1089_p0 = scmp.ge.s32.totalorder %s1134_s25, 1  ;;  %s1134_s25 = sphi %s1207_s25, %s23_s25  }
   0x2   : > { %p397_p1 = scmp.lt.s32.totalorder %s1134_s25, 3 }
   0x4   : > { %p398_p2 = pnand %p1089_p0, %p397_p1 }
   0x5   : > { %p445_p3 = scmp.lt.s32.totalorder (!%p398_p2), %s1085_s26, 1 }
   0x6   : > { %401 = sbr.rel (%p398_p2) target bundleno = 619 (0x26b), region = 72 }
   0xb   : > { %v547_v0 = vld [vmem:[%s1701_s3 + $0xb8] sm:$0xff]  ;;  %v546_v1 = vld [vmem:[%s1701_s3 + $0xb0] sm:$0xff]  ;;  %v545_v5 = vld [vmem:[%s1701_s3 + $0xa8] sm:$0xff]  ;;  %s1713_s26 = smov (!%p445_p3, %s1085_s26), 1  ;;  %vm590_vm0 = vcmask 64512   ;;  %vm479_vm1 = vcmask 523264  }
   0xc   : > { %v478_v2 = vld [vmem:[%s1701_s3 + $0x78] sm:$0xff]  ;;  %562 = vmatpush.msra.mxu2 %v547_v0  ;;  %v477_v4 = vld [vmem:[%s1701_s3 + $0x70] sm:$0xff]  ;;  %v476_v7 = vld [vmem:[%s1701_s3 + $0x68] sm:$0xff]  ;;  %s1111_s17 = sshll.u32 %s1713_s26, 4  ;;  %s1112_s24 = smul.u32 24, %s1713_s26  ;;  %vm766_vm2 = vcmask 130048  }
   0xd   : > { %494 = vmatpush.msra.mxu0 %v478_v2  ;;  %v468_v3 = vld [vmem:[%s1701_s3 + $0x38] sm:$0xff]  ;;  %v467_v6 = vld [vmem:[%s1701_s3 + $0x30] sm:$0xff]  ;;  %v466_v8 = vld [vmem:[%s1701_s3 + $0x28] sm:$0xff]  ;;  %s1264_s29 = scalar_lea.vmem %s1699_s1, %s1111_s17  ;;  %s1093_s15 = sshll.u32 %s1713_s26, 3 }
   0xe   : > { %523 = vmatpush.msra.mxu1 %v468_v3  ;;  %563 = vmatpush.msra.mxu2 %v546_v1  ;;  %v544_v9 = vld [vmem:[%s1701_s3 + $0xa0] sm:$0xff]  ;;  %v543_v12 = vld [vmem:[%s1701_s3 + $0x98] sm:$0xff]  ;;  %v542_v15 = vld [vmem:[%s1701_s3 + $0x90] sm:$0xff]  ;;  %s1288_s14 = scalar_lea.vmem %s1698_s0, %s1112_s24  ;;  %s458_s17 = scalar_lea.vmem %s1711_s13, %s1093_s15 }
   0xf   : > { %495 = vmatpush.msra.mxu0 %v477_v4  ;;  %v475_v10 = vld [vmem:[%s1701_s3 + $0x60] sm:$0xff]  ;;  %v474_v13 = vld [vmem:[%s1701_s3 + $0x58] sm:$0xff]  ;;  %v473_v16 = vld [vmem:[%s1701_s3 + $0x50] sm:$0xff] }
  0x10   : > { %524 = vmatpush.msra.mxu1 %v467_v6  ;;  %564 = vmatpush.msra.mxu2 %v545_v5  ;;  %v465_v11 = vld [vmem:[%s1701_s3 + $0x20] sm:$0xff]  ;;  %v464_v14 = vld [vmem:[%s1701_s3 + $0x18] sm:$0xff]  ;;  %v463_v17 = vld [vmem:[%s1701_s3 + $0x10] sm:$0xff] }
  0x11   : > { %496 = vmatpush.msra.mxu0 %v476_v7  ;;  %v589_v18 = vld [vmem:[%s1700_s2] sm:$0xff]  ;;  %v541_v20 = vld [vmem:[%s1701_s3 + $0x88] sm:$0xff]  ;;  %v657_v25 = vld [vmem:[%s1705_s7 + $0x78] sm:$0xff]  ;;  %v1136_v7 = vmov 0.0  }
  0x12   : > { %525 = vmatpush.msra.mxu1 %v466_v8  ;;  %565 = vmatpush.msra.mxu2 %v544_v9  ;;  %v587_v19 = vld [vmem:[%s1264_s29] sm:$0xff]  ;;  %v472_v21 = vld [vmem:[%s1701_s3 + $0x48] sm:$0xff]  ;;  %v673_v30 = vld [vmem:[%s1705_s7 + $0xf8] sm:$0xff]  ;;  %634 = vst [vmem:[#allocation2] sm:$0x1] %v1136_v7 }
  0x13   : > { %497 = vmatpush.msra.mxu0 %v475_v10  ;;  %612 = vmatpush.msra.mxu3 %v589_v18  ;;  %v462_v22 = vld [vmem:[%s1701_s3 + $0x8] sm:$0xff]  ;;  %v540_v23 = vld [vmem:[%s1701_s3 + $0x80] sm:$0xff]  ;;  %v656_v31 = vld [vmem:[%s1705_s7 + $0x70] sm:$0xff]  ;;  %635 = vst [vmem:[#allocation2 + $0x11] sm:$0x1] %v1136_v7 }
  0x14   : > { %526 = vmatpush.msra.mxu1 %v465_v11  ;;  %566 = vmatpush.msra.mxu2 %v543_v12  ;;  %v471_v24 = vld [vmem:[%s1701_s3 + $0x40] sm:$0xff]  ;;  %v588_v32 = vld [vmem:[%s1264_s29 + $0x8] sm:$0xff]  ;;  %v672_v33 = vld [vmem:[%s1705_s7 + $0xf0] sm:$0xff] }
  0x15   : > { %498 = vmatpush.msra.mxu0 %v474_v13  ;;  %1100 = vmatmul.msk.f32.vlgmr.msra.gmra.mxu3 %vm590_vm0, %v587_v19  ;;  %v538_v26 = vld [vmem:[%s1288_s14 + $0x2] sm:$0xff]  ;;  %v539_v37 = vld [vmem:[%s1288_s14 + $0xa] sm:$0xff]  ;;  %v669_v41 = vld [vmem:[%s1705_s7 + $0xd8] sm:$0xff] }
  0x16   : > { %527 = vmatpush.msra.mxu1 %v464_v14  ;;  %567 = vmatpush.msra.mxu2 %v542_v15  ;;  %v461_v27 = vld [vmem:[%s1701_s3] sm:$0xff]  ;;  %v655_v34 = vld [vmem:[%s1705_s7 + $0x68] sm:$0xff]  ;;  %v668_v42 = vld [vmem:[%s1705_s7 + $0xd0] sm:$0xff] }
  0x17   : > { %499 = vmatpush.msra.mxu0 %v473_v16  ;;  %v469_v28 = vld [vmem:[%s1288_s14 + $0x1] sm:$0xff]  ;;  %694 = vmatpush.msrb.mxu3 %v657_v25  ;;  %v470_v39 = vld [vmem:[%s1288_s14 + $0x9] sm:$0xff]  ;;  %v653_v45 = vld [vmem:[%s1705_s7 + $0x58] sm:$0xff] }
  0x18   : > { %528 = vmatpush.msra.mxu1 %v463_v17  ;;  %568 = vmatpush.msra.mxu2 %v541_v20  ;;  %v459_v29 = vld [vmem:[%s1288_s14] sm:$0xff]  ;;  %v671_v35 = vld [vmem:[%s1705_s7 + $0xe8] sm:$0xff]  ;;  %v665_v46 = vld [vmem:[%s1705_s7 + $0xb8] sm:$0xff] }
  0x19   : > { %500 = vmatpush.msra.mxu0 %v472_v21  ;;  %695 = vmatpush.msrb.mxu3 %v656_v31  ;;  %v654_v36 = vld [vmem:[%s1705_s7 + $0x60] sm:$0xff]  ;;  %v460_v40 = vld [vmem:[%s1288_s14 + $0x8] sm:$0xff]  ;;  %v689_v47 = vld [vmem:[%s1705_s7 + $0x178] sm:$0xff] }
  0x1a   : > { %529 = vmatpush.msra.mxu1 %v462_v22  ;;  %569 = vmatpush.msra.mxu2 %v540_v23  ;;  %v670_v38 = vld [vmem:[%s1705_s7 + $0xe0] sm:$0xff]  ;;  %v667_v43 = vld [vmem:[%s1705_s7 + $0xc8] sm:$0xff]  ;;  %v652_v48 = vld [vmem:[%s1705_s7 + $0x50] sm:$0xff] }
  0x1b   : > { %501 = vmatpush.msra.mxu0 %v471_v24  ;;  %1098 = vmatmul.msk.f32.vlgmr.msra.gmra.mxu2 %vm479_vm1, %v538_v26  ;;  %v666_v44 = vld [vmem:[%s1705_s7 + $0xc0] sm:$0xff]  ;;  %v664_v49 = vld [vmem:[%s1705_s7 + $0xb0] sm:$0xff]  ;;  %v651_v51 = vld [vmem:[%s1705_s7 + $0x48] sm:$0xff] }
  0x1c   : > { %530 = vmatpush.msra.mxu1 %v461_v27  ;;  %1094 = vmatmul.msk.f32.vlgmr.msra.gmra.mxu0 %vm479_vm1, %v469_v28  ;;  %v688_v50 = vld [vmem:[%s1705_s7 + $0x170] sm:$0xff]  ;;  %v663_v52 = vld [vmem:[%s1705_s7 + $0xa8] sm:$0xff]  ;;  %v650_v54 = vld [vmem:[%s1705_s7 + $0x40] sm:$0xff] }
  0x1d   : > { %1096 = vmatmul.msk.f32.vlgmr.msra.gmra.mxu1 %vm479_vm1, %v459_v29  ;;  %717 = vmatpush.msrb.mxu0 %v673_v30  ;;  %v687_v53 = vld [vmem:[%s1705_s7 + $0x168] sm:$0xff]  ;;  %v662_v55 = vld [vmem:[%s1705_s7 + $0xa0] sm:$0xff]  ;;  %v649_v57 = vld [vmem:[%s1705_s7 + $0x38] sm:$0xff] }
  0x1e   : > { %1101 = vmatmul.msk.f32.gmra.mxu3 %vm590_vm0, %v588_v32  ;;  %740 = vmatpush.msrb.mxu1 %v689_v47  ;;  %v686_v56 = vld [vmem:[%s1705_s7 + $0x160] sm:$0xff]  ;;  %v661_v58 = vld [vmem:[%s1705_s7 + $0x98] sm:$0xff]  ;;  %v648_v60 = vld [vmem:[%s1705_s7 + $0x30] sm:$0xff] }
  0x1f   : > { %718 = vmatpush.msrb.mxu0 %v672_v33  ;;  %696 = vmatpush.msrb.mxu3 %v655_v34  ;;  %v685_v59 = vld [vmem:[%s1705_s7 + $0x158] sm:$0xff]  ;;  %v660_v61 = vld [vmem:[%s1705_s7 + $0x90] sm:$0xff]  ;;  %v647_v63 = vld [vmem:[%s1705_s7 + $0x28] sm:$0xff] }
  0x20   : > { %741 = vmatpush.msrb.mxu1 %v688_v50  ;;  %v684_v62 = vld [vmem:[%s1705_s7 + $0x150] sm:$0xff]  ;;  %v659_v0 = vld [vmem:[%s1705_s7 + $0x88] sm:$0xff]  ;;  %v646_v2 = vld [vmem:[%s1705_s7 + $0x20] sm:$0xff] }
  0x21   : > { %719 = vmatpush.msrb.mxu0 %v671_v35  ;;  %697 = vmatpush.msrb.mxu3 %v654_v36  ;;  %v683_v1 = vld [vmem:[%s1705_s7 + $0x148] sm:$0xff]  ;;  %v658_v3 = vld [vmem:[%s1705_s7 + $0x80] sm:$0xff]  ;;  %v645_v5 = vld [vmem:[%s1705_s7 + $0x18] sm:$0xff] }
  0x22   : > { %742 = vmatpush.msrb.mxu1 %v687_v53  ;;  %v682_v4 = vld [vmem:[%s1705_s7 + $0x140] sm:$0xff]  ;;  %v681_v6 = vld [vmem:[%s1705_s7 + $0x138] sm:$0xff]  ;;  %v644_v8 = vld [vmem:[%s1705_s7 + $0x10] sm:$0xff] }
  0x23   : > { %1099 = vmatmul.msk.f32.gmra.mxu2 %vm479_vm1, %v539_v37  ;;  %720 = vmatpush.msrb.mxu0 %v670_v38  ;;  %v680_v9 = vld [vmem:[%s1705_s7 + $0x130] sm:$0xff]  ;;  %v643_v10 = vld [vmem:[%s1705_s7 + $0x8] sm:$0xff]  ;;  %v642_v12 = vld [vmem:[%s1705_s7] sm:$0xff] }
  0x24   : > { %1095 = vmatmul.msk.f32.gmra.mxu0 %vm479_vm1, %v470_v39  ;;  %698 = vmatpush.msrb.mxu3 %v653_v45  ;;  %v679_v11 = vld [vmem:[%s1705_s7 + $0x128] sm:$0xff]  ;;  %v678_v13 = vld [vmem:[%s1705_s7 + $0x120] sm:$0xff]  ;;  %v677_v14 = vld [vmem:[%s1705_s7 + $0x118] sm:$0xff] }
  0x25   : > { %1097 = vmatmul.msk.f32.gmra.mxu1 %vm479_vm1, %v460_v40  ;;  %721 = vmatpush.msrb.mxu0 %v669_v41  ;;  %v676_v15 = vld [vmem:[%s1705_s7 + $0x110] sm:$0xff]  ;;  %v675_v16 = vld [vmem:[%s1705_s7 + $0x108] sm:$0xff]  ;;  %v674_v17 = vld [vmem:[%s1705_s7 + $0x100] sm:$0xff] }
  0x26   : > { %699 = vmatpush.msrb.mxu3 %v652_v48  ;;  %743 = vmatpush.msrb.mxu1 %v686_v56  ;;  %v1122_v21 = vld [vmem:[%s1702_s4] ss:$0 sm:$0xff]  ;;  %v878_v56 = vld [vmem:[%s1707_s9 + $0x68] sm:$0xff] }
  0x27   : > { %722 = vmatpush.msrb.mxu0 %v668_v42  ;;  %v1123_v27 = vld [vmem:[%s1703_s5] ss:$0 sm:$0xff] }
  0x28   : > { %700 = vmatpush.msrb.mxu3 %v651_v51  ;;  %744 = vmatpush.msrb.mxu1 %v685_v59  ;;  %v1124_v32 = vld [vmem:[%s1704_s6] ss:$0 sm:$0xff]  ;;  %v880_v51 = vld [vmem:[%s1707_s9 + $0x78] sm:$0xff] }
  0x29   : > { %723 = vmatpush.msrb.mxu0 %v667_v43  ;;  %v877_v59 = vld [vmem:[%s1707_s9 + $0x60] sm:$0xff] }
  0x2a   : > { %701 = vmatpush.msrb.mxu3 %v650_v54  ;;  %745 = vmatpush.msrb.mxu1 %v684_v62  ;;  %v879_v54 = vld [vmem:[%s1707_s9 + $0x70] sm:$0xff] }
  0x2b   : > { %724 = vmatpush.msrb.mxu0 %v666_v44 }
  0x2c   : > { %702 = vmatpush.msrb.mxu3 %v649_v57  ;;  %746 = vmatpush.msrb.mxu1 %v683_v1  ;;  %v894_v57 = vld [vmem:[%s1707_s9 + $0xe8] sm:$0xff]  ;;  %v892_v1 = vld [vmem:[%s1707_s9 + $0xd8] sm:$0xff] }
  0x2d   : > { %725 = vmatpush.msrb.mxu0 %v665_v46 }
  0x2e   : > { %703 = vmatpush.msrb.mxu3 %v648_v60  ;;  %747 = vmatpush.msrb.mxu1 %v682_v4  ;;  %v893_v60 = vld [vmem:[%s1707_s9 + $0xe0] sm:$0xff]  ;;  %v875_v4 = vld [vmem:[%s1707_s9 + $0x50] sm:$0xff] }
  0x2f   : > { %726 = vmatpush.msrb.mxu0 %v664_v49  ;;  %v1125_v49 = vld [vmem:[%s1706_s8] ss:$0 sm:$0xff] }
  0x30   : > { %704 = vmatpush.msrb.mxu3 %v647_v63  ;;  %748 = vmatpush.msrb.mxu1 %v681_v6 }
  0x31   : > { %727 = vmatpush.msrb.mxu0 %v663_v52  ;;  %v896_v52 = vld [vmem:[%s1707_s9 + $0xf8] sm:$0xff] }
  0x32   : > { %705 = vmatpush.msrb.mxu3 %v646_v2  ;;  %749 = vmatpush.msrb.mxu1 %v680_v9  ;;  %v874_v9 = vld [vmem:[%s1707_s9 + $0x48] sm:$0xff] }
  0x33   : > { %728 = vmatpush.msrb.mxu0 %v662_v55  ;;  %v895_v55 = vld [vmem:[%s1707_s9 + $0xf0] sm:$0xff] }
  0x34   : > { %706 = vmatpush.msrb.mxu3 %v645_v5  ;;  %750 = vmatpush.msrb.mxu1 %v679_v11  ;;  %v891_v5 = vld [vmem:[%s1707_s9 + $0xd0] sm:$0xff] }
  0x35   : > { %729 = vmatpush.msrb.mxu0 %v661_v58 }
  0x36   : > { %707 = vmatpush.msrb.mxu3 %v644_v8  ;;  %751 = vmatpush.msrb.mxu1 %v678_v13  ;;  %v1107_v13 = vld [vmem:[%s1710_s12 + $0x18] sm:$0xff] }
  0x37   : > { %730 = vmatpush.msrb.mxu0 %v660_v61 }
  0x38   : > { %708 = vmatpush.msrb.mxu3 %v643_v10  ;;  %752 = vmatpush.msrb.mxu1 %v677_v14  ;;  %v890_v10 = vld [vmem:[%s1707_s9 + $0xc8] sm:$0xff]  ;;  %v928_v14 = vld [vmem:[%s1707_s9 + $0x1f8] sm:$0xff] }
  0x39   : > { %731 = vmatpush.msrb.mxu0 %v659_v0  ;;  %v876_v0 = vld [vmem:[%s1707_s9 + $0x58] sm:$0xff] }
  0x3a   : > { %709 = vmatpush.msrb.mxu3 %v642_v12  ;;  %753 = vmatpush.msrb.mxu1 %v676_v15  ;;  %v765_v12 = vld [vmem:[%s1710_s12] sm:$0xff] }
  0x3b   : > { %732 = vmatpush.msrb.mxu0 %v658_v3  ;;  %v873_v15 = vld [vmem:[%s1707_s9 + $0x40] sm:$0xff] }
  0x3c   : > { %754 = vmatpush.msrb.mxu1 %v675_v16  ;;  %v889_v16 = vld [vmem:[%s1707_s9 + $0xc0] sm:$0xff] }
  0x3d   : > { %929 = vmatpush.msra.mxu0 %v880_v51  ;;  %v919_v51 = vld [vmem:[%s1707_s9 + $0x1b0] sm:$0xff] }
  0x3e   : > { %755 = vmatpush.msrb.mxu1 %v674_v17  ;;  %v927_v17 = vld [vmem:[%s1707_s9 + $0x1f0] sm:$0xff] }
  0x3f   : > { %930 = vmatpush.msra.mxu0 %v879_v54  ;;  %v901_v54 = vld [vmem:[%s1707_s9 + $0x120] sm:$0xff] }
  0x40   : > { %949 = vmatpush.msra.mxu1 %v896_v52  ;;  %v883_v52 = vld [vmem:[%s1707_s9 + $0x90] sm:$0xff] }
  0x41   : > { %931 = vmatpush.msra.mxu0 %v878_v56  ;;  %v900_v56 = vld [vmem:[%s1707_s9 + $0x118] sm:$0xff] }
  0x42   : > { %950 = vmatpush.msra.mxu1 %v895_v55  ;;  %v918_v55 = vld [vmem:[%s1707_s9 + $0x1a8] sm:$0xff] }
  0x43   : > { %932 = vmatpush.msra.mxu0 %v877_v59  ;;  %v916_v59 = vld [vmem:[%s1707_s9 + $0x198] sm:$0xff] }
  0x44   : > { %951 = vmatpush.msra.mxu1 %v894_v57  ;;  %v917_v57 = vld [vmem:[%s1707_s9 + $0x1a0] sm:$0xff] }
  0x45   : > { %933 = vmatpush.msra.mxu0 %v876_v0  ;;  %v914_v0 = vld [vmem:[%s1707_s9 + $0x188] sm:$0xff] }
  0x46   : > { %952 = vmatpush.msra.mxu1 %v893_v60  ;;  %v881_v60 = vld [vmem:[%s1707_s9 + $0x80] sm:$0xff] }
  0x47   : > { %934 = vmatpush.msra.mxu0 %v875_v4 }
  0x48   : > { %953 = vmatpush.msra.mxu1 %v892_v1  ;;  %v913_v1 = vld [vmem:[%s1707_s9 + $0x180] sm:$0xff] }
  0x49   : > { %935 = vmatpush.msra.mxu0 %v874_v9 }
  0x4a   : > { %954 = vmatpush.msra.mxu1 %v891_v5 }
  0x4b   : > { %936 = vmatpush.msra.mxu0 %v873_v15 }
  0x4c   : > { %955 = vmatpush.msra.mxu1 %v890_v10 }
  0x4e   : > { %956 = vmatpush.msra.mxu1 %v889_v16 }
  0x98   : > { %v614_v28 = vpop.f32.mrf.mxu3 }
  0x99   : > { %v503_v18 = vpop.f32.mrf.mxu0 }
  0x9a   : > { %v532_v19 = vpop.f32.mrf.mxu1 }
  0x9b   : > { %v533_v20 = vadd.f32 %v532_v19, %v503_v18  ;;  %v872_v18 = vld [vmem:[%s1707_s9 + $0x38] sm:$0xff]  ;;  %v926_v19 = vld [vmem:[%s1707_s9 + $0x1e8] sm:$0xff] }
  0x9c   : > { %937 = vmatpush.msra.mxu0 %v872_v18 }
  0x9e   : > { %v571_v22 = vpop.f32.mrf.mxu2 }
  0x9f   : > { %v577_v23 = vadd.f32 %v571_v22, %v533_v20  ;;  %v888_v20 = vld [vmem:[%s1707_s9 + $0xb8] sm:$0xff]  ;;  %v1103_v22 = vld [vmem:[%s1710_s12 + $0x8] sm:$0xff] }
  0xa0   : > { %957 = vmatpush.msra.mxu1 %v888_v20 }
  0xa1   : > { %v583_v24 = vadd.f32 %v1122_v21, %v577_v23  ;;  %v506_v25 = vpop.f32.mrf.mxu0  ;;  %v617_v39 = vpop.f32.mrf.mxu3  ;;  %v912_v23 = vld [vmem:[%s1707_s9 + $0x178] sm:$0xff] }
  0xa2   : > { %v535_v26 = vpop.f32.mrf.mxu1 }
  0xa3   : > { %v585_v29 = vmax.f32 %v583_v24, 0.0  ;;  %v536_v30 = vadd.f32 %v535_v26, %v506_v25  ;;  %v924_v24 = vld [vmem:[%s1707_s9 + $0x1d8] sm:$0xff]  ;;  %v911_v25 = vld [vmem:[%s1707_s9 + $0x170] sm:$0xff] }
  0xa4   : > { %v923_v26 = vld [vmem:[%s1707_s9 + $0x1d0] sm:$0xff] }
  0xa5   : > { %v624_v31 = vmul.f32 %v1123_v27, %v585_v29  ;;  %v1105_v29 = vld [vmem:[%s1710_s12 + $0x10] sm:$0xff] }
  0xa6   : > { %v574_v33 = vpop.f32.mrf.mxu2 }
  0xa7   : > { %v578_v34 = vadd.f32 %v574_v33, %v536_v30  ;;  %v626_v35 = vadd.f32 %v624_v31, %v614_v28  ;;  %v909_v28 = vld [vmem:[%s1707_s9 + $0x160] sm:$0xff]  ;;  %v908_v30 = vld [vmem:[%s1707_s9 + $0x158] sm:$0xff]  ;;  %v907_v31 = vld [vmem:[%s1707_s9 + $0x150] sm:$0xff] }
  0xa8   : > { %v871_v33 = vld [vmem:[%s1707_s9 + $0x30] sm:$0xff] }
  0xa9   : > { %v584_v36 = vadd.f32 %v1122_v21, %v578_v34  ;;  %v632_v37 = vadd.f32 %v1124_v32, %v626_v35  ;;  %v925_v21 = vld [vmem:[%s1707_s9 + $0x1e0] sm:$0xff]  ;;  %938 = vmatpush.msra.mxu0 %v871_v33  ;;  %v870_v34 = vld [vmem:[%s1707_s9 + $0x28] sm:$0xff] }
  0xaa   : > { %v869_v35 = vld [vmem:[%s1707_s9 + $0x20] sm:$0xff] }
  0xab   : > { %v586_v38 = vmax.f32 %v584_v36, 0.0  ;;  %636 = vst [vmem:[#allocation2 + $0x1] sm:$0xff] %v632_v37  ;;  %733 = vmatmul.f32.vlgmr.msrb.gmra.mxu0 %v632_v37  ;;  %v868_v36 = vld [vmem:[%s1707_s9 + $0x18] sm:$0xff]  ;;  %v887_v37 = vld [vmem:[%s1707_s9 + $0xb0] sm:$0xff] }
  0xac   : > { %939 = vmatpush.msra.mxu0 %v870_v34  ;;  %958 = vmatpush.msra.mxu1 %v887_v37 }
  0xad   : > { %v625_v40 = vmul.f32 %v1123_v27, %v586_v38  ;;  %v910_v27 = vld [vmem:[%s1707_s9 + $0x168] sm:$0xff]  ;;  %v867_v38 = vld [vmem:[%s1707_s9 + $0x10] sm:$0xff] }
  0xae   : > { %940 = vmatpush.msra.mxu0 %v869_v35 }
  0xaf   : > { %v627_v41 = vadd.f32 %v625_v40, %v617_v39  ;;  %v886_v39 = vld [vmem:[%s1707_s9 + $0xa8] sm:$0xff] }
  0xb0   : > { %941 = vmatpush.msra.mxu0 %v868_v36  ;;  %v866_v40 = vld [vmem:[%s1707_s9 + $0x8] sm:$0xff]  ;;  %959 = vmatpush.msra.mxu1 %v886_v39 }
  0xb1   : > { %v633_v42 = vadd.f32 %v1124_v32, %v627_v41  ;;  %v906_v32 = vld [vmem:[%s1707_s9 + $0x148] sm:$0xff]  ;;  %v905_v41 = vld [vmem:[%s1707_s9 + $0x140] sm:$0xff] }
  0xb2   : > { %v638_v43 = vld [vmem:[#allocation2] sm:$0xff]  ;;  %942 = vmatpush.msra.mxu0 %v867_v38 }
  0xb3   : > { %710 = vmatmul.f32.vlgmr.msrb.gmra.mxu3 %v638_v43  ;;  %637 = vst [vmem:[#allocation2 + $0x9] sm:$0xff] %v633_v42  ;;  %736 = vmatmul.f32.gmra.mxu0 %v633_v42  ;;  %v922_v42 = vld [vmem:[%s1707_s9 + $0x1c8] sm:$0xff]  ;;  %v904_v43 = vld [vmem:[%s1707_s9 + $0x138] sm:$0xff] }
  0xb4   : > { %943 = vmatpush.msra.mxu0 %v866_v40 }
  0xba   : > { %v639_v44 = vld [vmem:[#allocation2 + $0x8] sm:$0xff] }
  0xbb   : > { %v640_v45 = vld [vmem:[#allocation2 + $0x2] sm:$0xff]  ;;  %713 = vmatmul.f32.gmra.mxu3 %v639_v44  ;;  %v641_v46 = vld [vmem:[#allocation2 + $0xa] sm:$0xff] }
  0xbc   : > { %756 = vmatmul.f32.vlgmr.msrb.gmra.mxu1 %v640_v45  ;;  %v921_v44 = vld [vmem:[%s1707_s9 + $0x1c0] sm:$0xff]  ;;  %v903_v45 = vld [vmem:[%s1707_s9 + $0x130] sm:$0xff] }
  0xc4   : > { %759 = vmatmul.f32.gmra.mxu1 %v641_v46  ;;  %v920_v46 = vld [vmem:[%s1707_s9 + $0x1b8] sm:$0xff] }
 0x128   : > { %v734_v47 = vpop.f32.mrf.mxu0 }
 0x130   : > { %v737_v63 = vpop.f32.mrf.mxu0 }
 0x136   : > { %v711_v48 = vpop.f32.mrf.mxu3 }
 0x137   : > { %v712_v53 = vadd.f32 %v1125_v49, %v711_v48  ;;  %v884_v48 = vld [vmem:[%s1707_s9 + $0x98] sm:$0xff] }
 0x139   : > { %v757_v50 = vpop.f32.mrf.mxu1  ;;  %v735_v61 = vadd.f32 %v734_v47, %v712_v53  ;;  %v885_v47 = vld [vmem:[%s1707_s9 + $0xa0] sm:$0xff]  ;;  %v882_v53 = vld [vmem:[%s1707_s9 + $0x88] sm:$0xff] }
 0x13a   : > { %960 = vmatpush.msra.mxu1 %v885_v47 }
 0x13b   : > { %v758_v6 = vadd.f32 %v757_v50, %v735_v61  ;;  %v902_v50 = vld [vmem:[%s1707_s9 + $0x128] sm:$0xff] }
 0x13c   : > { %961 = vmatpush.msra.mxu1 %v884_v48  ;;  %v898_v61 = vld [vmem:[%s1707_s9 + $0x108] sm:$0xff] }
 0x13d   : > { %v763_v11 = vmax.f32 %v758_v6, 0.0 }
 0x13e   : > { %v714_v58 = vpop.f32.mrf.mxu3  ;;  %962 = vmatpush.msra.mxu1 %v883_v52 }
 0x13f   : > { %v715_v62 = vadd.f32 %v1125_v49, %v714_v58  ;;  %v865_v49 = vld [vmem:[%s1707_s9] sm:$0xff]  ;;  %v899_v58 = vld [vmem:[%s1707_s9 + $0x110] sm:$0xff] }
 0x140   : > { %944 = vmatpush.msra.mxu0 %v865_v49  ;;  %963 = vmatpush.msra.mxu1 %v882_v53 }
 0x141   : > { %v738_v2 = vadd.f32 %v737_v63, %v715_v62  ;;  %v760_v3 = vpop.f32.mrf.mxu1  ;;  %v915_v62 = vld [vmem:[%s1707_s9 + $0x190] sm:$0xff]  ;;  %v897_v63 = vld [vmem:[%s1707_s9 + $0x100] sm:$0xff] }
 0x142   : > { %964 = vmatpush.msra.mxu1 %v881_v60 }
 0x143   : > { %v761_v7 = vadd.f32 %v760_v3, %v738_v2 }
 0x145   : > { %v764_v8 = vmax.f32 %v761_v7, 0.0 }
 0x147   : > { %784 = vmatpush.msrb.mxu2 %v764_v8  ;;  %859 = vmatpush.msra.mxu3 %v764_v8 }
 0x149   : > { %785 = vmatpush.msrb.mxu2 %v763_v11  ;;  %860 = vmatpush.msra.mxu3 %v763_v11 }
 0x14a   : > { %1102 = vmatmul.msk.f32.vlgmr.msrb.gmra.mxu2 %vm766_vm2, %v765_v12  ;;  %1108 = vmatmul.msk.f32.vlgmr.msra.gmra.mxu3 %vm766_vm2, %v1107_v13  ;;  %v1126_v12 = vld [vmem:[%s1708_s10] ss:$0 sm:$0xff] }
 0x14b   : > { %809 = vmatpush.msra.mxu2 %v764_v8  ;;  %989 = vmatpush.msrb.mxu3 %v928_v14  ;;  %v1127_v14 = vld [vmem:[%s1709_s11] ss:$0 sm:$0xff] }
 0x14d   : > { %810 = vmatpush.msra.mxu2 %v763_v11  ;;  %990 = vmatpush.msrb.mxu3 %v927_v17 }
 0x14f   : > { %834 = vmatpush.msrb.mxu2 %v764_v8  ;;  %991 = vmatpush.msrb.mxu3 %v926_v19 }
 0x151   : > { %835 = vmatpush.msrb.mxu2 %v763_v11  ;;  %992 = vmatpush.msrb.mxu3 %v925_v21 }
 0x152   : > { %1104 = vmatmul.msk.f32.vlgmr.msra.gmra.mxu2 %vm766_vm2, %v1103_v22 }
 0x153   : > { %969 = vmatpush.msra.mxu2 %v912_v23  ;;  %993 = vmatpush.msrb.mxu3 %v924_v24 }
 0x155   : > { %970 = vmatpush.msra.mxu2 %v911_v25  ;;  %994 = vmatpush.msrb.mxu3 %v923_v26 }
 0x157   : > { %971 = vmatpush.msra.mxu2 %v910_v27  ;;  %995 = vmatpush.msrb.mxu3 %v922_v42 }
 0x159   : > { %972 = vmatpush.msra.mxu2 %v909_v28  ;;  %996 = vmatpush.msrb.mxu3 %v921_v44 }
 0x15a   : > { %1106 = vmatmul.msk.f32.vlgmr.msrb.gmra.mxu2 %vm766_vm2, %v1105_v29 }
 0x15b   : > { %973 = vmatpush.msra.mxu2 %v908_v30  ;;  %997 = vmatpush.msrb.mxu3 %v920_v46 }
 0x15d   : > { %974 = vmatpush.msra.mxu2 %v907_v31  ;;  %998 = vmatpush.msrb.mxu3 %v919_v51 }
 0x15f   : > { %975 = vmatpush.msra.mxu2 %v906_v32  ;;  %999 = vmatpush.msrb.mxu3 %v918_v55 }
 0x161   : > { %976 = vmatpush.msra.mxu2 %v905_v41  ;;  %1000 = vmatpush.msrb.mxu3 %v917_v57 }
 0x163   : > { %977 = vmatpush.msra.mxu2 %v904_v43  ;;  %1001 = vmatpush.msrb.mxu3 %v916_v59 }
 0x165   : > { %978 = vmatpush.msra.mxu2 %v903_v45  ;;  %1002 = vmatpush.msrb.mxu3 %v915_v62 }
 0x167   : > { %979 = vmatpush.msra.mxu2 %v902_v50  ;;  %1003 = vmatpush.msrb.mxu3 %v914_v0 }
 0x169   : > { %980 = vmatpush.msra.mxu2 %v901_v54  ;;  %1004 = vmatpush.msrb.mxu3 %v913_v1 }
 0x16b   : > { %981 = vmatpush.msra.mxu2 %v900_v56 }
 0x16d   : > { %982 = vmatpush.msra.mxu2 %v899_v58 }
 0x16f   : > { %983 = vmatpush.msra.mxu2 %v898_v61 }
 0x171   : > { %984 = vmatpush.msra.mxu2 %v897_v63 }
 0x1cd   : > { %v787_v2 = vpop.f32.mrf.mxu2  ;;  %v862_v3 = vpop.f32.mrf.mxu3 }
 0x1ce   : > { %945 = vmatmul.f32.vlgmr.msra.gmra.mxu0 %v787_v2  ;;  %1005 = vmatmul.f32.vlgmr.msrb.gmra.mxu3 %v862_v3 }
 0x1d5   : > { %v812_v4 = vpop.f32.mrf.mxu2 }
 0x1d6   : > { %965 = vmatmul.f32.vlgmr.msra.gmra.mxu1 %v812_v4 }
 0x1dd   : > { %v837_v5 = vpop.f32.mrf.mxu2 }
 0x1de   : > { %985 = vmatmul.f32.vlgmr.msra.gmra.mxu2 %v837_v5 }
 0x24b   : > { %v946_v7 = vpop.f32.mrf.mxu0 }
 0x251   : > { %v1006_v10 = vpop.f32.mrf.mxu3 }
 0x253   : > { %v966_v6 = vpop.f32.mrf.mxu1 }
 0x254   : > { %v967_v8 = vadd.f32 %v966_v6, %v946_v7 }
 0x261   : > { %v986_v9 = vpop.f32.mrf.mxu2 }
 0x262   : > { %v987_v11 = vadd.f32 %v986_v9, %v967_v8 }
 0x264   : > { %v1007_v13 = vadd.f32 %v1006_v10, %v987_v11 }
 0x266   : > { %v1013_v15 = vmul.f32 %v1126_v12, %v1007_v13 }
 0x268   : > { %v1018_v16 = vadd.f32 %v1127_v14, %v1013_v15 }
 0x26a   : > { %1019 = vst.msk [vmem:[%s458_s17] sm:$0xff] %vm479_vm1, %v1018_v16 }
 0x26b PF: > { %s23_s25 = sadd.s32 1, %s1134_s25  }
 0x26c   : > { %p20_p4 = scmp.ge.s32.totalorder %s23_s25, 4  }
 0x26e   :  { %22 = sbr.rel (!%p20_p4) target bundleno = 1 (0x1), region = 108 }

</bundles_post_ra>
